<compile_context>
chip_gen: v7x
topology: tpu7x:2x2x1
jax: 0.10.0
libtpu: 0.0.40
codegen_flags: <defaults>
</compile_context>

<pallas_src>
import math
import functools

import jax
import jax.numpy as jnp
from jax.experimental import pallas as pl
from jax.experimental.pallas import tpu as pltpu


def _mha_kernel(q_ref, k_ref, v_ref, mask_ref, b_ref, w_hbm_ref,
                out_ref, *rest, h: int, d_k: int, emit_scores: bool):
    if emit_scores:
        scores_ref, w_vmem, w_sem = rest
    else:
        (w_vmem, w_sem) = rest
        scores_ref = None

    # One-time weight load: HBM -> single-buffered VMEM scratch.  The batch grid axis
    # is "arbitrary" (sequential on one core), so program_id(0) == 0 runs exactly once
    # and the loaded weights persist in scratch for all later batch steps.
    @pl.when(pl.program_id(0) == 0)
    def _load_weights():
        cp = pltpu.make_async_copy(w_hbm_ref, w_vmem, w_sem)
        cp.start()
        cp.wait()

    scale = jnp.float32(1.0 / math.sqrt(d_k))

    q = q_ref[0]                                    # (S, D) f32
    k = k_ref[0]
    v = v_ref[0]
    neg = mask_ref[0].astype(jnp.float32)           # (S, S) additive mask: 0 / -1e9

    b = b_ref[...]                                  # (4, D) f32
    bq, bk, bv, bo = b[0:1], b[1:2], b[2:3], b[3:4]

    wq = w_vmem[0]                                  # (D, D) bf16
    wk = w_vmem[1]
    wv = w_vmem[2]
    wo = w_vmem[3]

    # Input projections: bf16 MXU operands, f32 accumulation.  The 1/sqrt(d_k) score
    # scale is folded into Q once (O(S*D) instead of O(h*S^2)).
    Q = ((jnp.dot(q.astype(jnp.bfloat16), wq, preferred_element_type=jnp.float32) + bq)
         * scale).astype(jnp.bfloat16)
    K = (jnp.dot(k.astype(jnp.bfloat16), wk, preferred_element_type=jnp.float32)
         + bk).astype(jnp.bfloat16)
    V = (jnp.dot(v.astype(jnp.bfloat16), wv, preferred_element_type=jnp.float32)
         + bv).astype(jnp.bfloat16)

    # Head split (S, D) -> (h, S, d_k) as a value (static lane slices + stack); no
    # VMEM-scratch store/load round-trip.
    Qh = jnp.stack([Q[:, i * d_k:(i + 1) * d_k] for i in range(h)], axis=0)
    Kh = jnp.stack([K[:, i * d_k:(i + 1) * d_k] for i in range(h)], axis=0)
    Vh = jnp.stack([V[:, i * d_k:(i + 1) * d_k] for i in range(h)], axis=0)

    # scores = (Q @ K^T) / sqrt(d_k), head-batched; scale already folded into Q.
    s = jnp.einsum('hqd,hkd->hqk', Qh, Kh, preferred_element_type=jnp.float32)
    s = s + neg[None]                               # masked_fill_(mask == 0, -1e9)

    # Numerically-stable softmax; elementwise math stays in f32.
    s = s - jnp.max(s, axis=-1, keepdims=True)
    p = jnp.exp(s)
    denom = jnp.sum(p, axis=-1, keepdims=True)

    if emit_scores:
        attn = p / denom                                   # exact: exported rows sum to 1
        scores_ref[0] = attn.astype(scores_ref.dtype)      # bf16 writeback (half the DMA)
    else:
        attn = p * pl.reciprocal(denom, approx=True)       # EUP slot, frees the VALU

    # Context per head, concat heads back to a lane-dense (S, D) slab, then ONE D-deep
    # output projection (fills the systolic array; no per-head partials / head-sum).
    ctx = jnp.einsum('hqk,hkd->hqd', attn.astype(jnp.bfloat16), Vh,
                     preferred_element_type=jnp.float32)   # (h, S, d_k) f32
    ctx_bf = ctx.astype(jnp.bfloat16)
    ctx2d = jnp.concatenate([ctx_bf[i] for i in range(h)], axis=-1)   # (S, D) bf16
    out_ref[0] = (jnp.dot(ctx2d, wo, preferred_element_type=jnp.float32) + bo
                  ).astype(out_ref.dtype)


def _vmem_limit_bytes(S, D, h, emit_scores):
    """Rough per-step VMEM footprint, doubled for headroom, capped for v7x (64 MiB)."""
    f32, bf16 = 4, 2
    buffers = (3 * 2 * S * D * f32        # q, k, v blocks (double-buffered)
               + 2 * S * S * bf16         # additive mask
               + 2 * 4 * D * f32          # stacked biases
               + 4 * D * D * bf16         # weights (single-buffered scratch)
               + 2 * S * D * f32)         # output block
    if emit_scores:
        buffers += 2 * h * S * S * bf16   # scores block
    temporaries = (3 * S * D * (f32 + bf16)      # Q/K/V (+ bf16 copies)
                   + 3 * h * S * S * f32         # logits / probs
                   + 2 * S * D * f32)            # ctx / out temp
    est = buffers + temporaries
    return int(min(max(2 * est, 16 * 2 ** 20), 64 * 2 ** 20))


def multi_head_attention(q, k, v, mask, params, *, h: int, return_scores: bool = False):
    """Pallas MHA forward.

    q, k, v: (B, S, D) f32; mask: (B, S, S) or (1, S, S), 0 = masked.
    Returns out (B, S, D) f32, and additionally the post-softmax attention map
    (B, h, S, S) bf16 when return_scores=True.
    """
    B, S, D = q.shape
    assert D % h == 0, "d_model is not divisible by h"
    d_k = D // h
    wq, bq, wk, bk, wv, bv, wo, bo = params

    # Stack the projection weights (already (D_in, D_out)) into one (4, D, D) bf16 slab:
    # DMA'd from HBM exactly once into single-buffered VMEM inside the kernel.
    w_all = jnp.stack([wq, wk, wv, wo], axis=0).astype(jnp.bfloat16)
    b_all = jnp.concatenate([bq, bk, bv, bo], axis=0).astype(jnp.float32)   # (4, D)

    # Additive mask (0 keep / -1e9 masked), bf16 to halve the per-step mask DMA.
    mb = mask.shape[0]
    assert mb in (1, B), "mask batch dim must be 1 or B"
    add_mask = jnp.where(mask == 0, -1e9, 0.0).astype(jnp.bfloat16)
    if mb == B:
        mask_spec = pl.BlockSpec((1, S, S), lambda b: (b, 0, 0))
    else:   # shared mask: same (S, S) block every batch step
        mask_spec = pl.BlockSpec((1, S, S), lambda b: (0, 0, 0))

    kernel = functools.partial(_mha_kernel, h=h, d_k=d_k, emit_scores=return_scores)

    in_specs = [
        pl.BlockSpec((1, S, D), lambda b: (b, 0, 0)),   # q
        pl.BlockSpec((1, S, D), lambda b: (b, 0, 0)),   # k
        pl.BlockSpec((1, S, D), lambda b: (b, 0, 0)),   # v
        mask_spec,                                      # additive mask
        pl.BlockSpec((4, D), lambda b: (0, 0)),         # stacked biases (tiny)
        pl.BlockSpec(memory_space=pl.ANY),              # stacked weights (HBM, one-time DMA)
    ]

    if return_scores:
        out_shape = (jax.ShapeDtypeStruct((B, S, D), jnp.float32),
                     jax.ShapeDtypeStruct((B, h, S, S), jnp.bfloat16))
        out_specs = [pl.BlockSpec((1, S, D), lambda b: (b, 0, 0)),
                     pl.BlockSpec((1, h, S, S), lambda b: (b, 0, 0, 0))]
    else:
        out_shape = jax.ShapeDtypeStruct((B, S, D), jnp.float32)
        out_specs = pl.BlockSpec((1, S, D), lambda b: (b, 0, 0))

    return pl.pallas_call(
        kernel,
        out_shape=out_shape,
        grid_spec=pltpu.PrefetchScalarGridSpec(
            num_scalar_prefetch=0,
            grid=(B,),
            in_specs=in_specs,
            out_specs=out_specs,
            scratch_shapes=[
                pltpu.VMEM((4, D, D), jnp.bfloat16),    # single-buffered weights
                pltpu.SemaphoreType.DMA(()),            # one-time weight DMA
            ],
        ),
        compiler_params=pltpu.CompilerParams(
            # "arbitrary": the step-0 weight load must run before every other batch
            # step, so the batch loop must not be split across megacore halves.
            dimension_semantics=("arbitrary",),
            vmem_limit_bytes=_vmem_limit_bytes(S, D, h, return_scores),
        ),
    )(q, k, v, add_mask, b_all, w_all)


def reference_mha(q, k, v, mask, params, *, h: int):
    """Pure-JAX reference mirroring the PyTorch forward (dropout p=0)."""
    B, S, D = q.shape
    d_k = D // h
    wq, bq, wk, bk, wv, bv, wo, bo = params
    Q = q @ wq + bq[0]
    K = k @ wk + bk[0]
    V = v @ wv + bv[0]
    Q = Q.reshape(B, S, h, d_k).transpose(0, 2, 1, 3)
    K = K.reshape(B, S, h, d_k).transpose(0, 2, 1, 3)
    V = V.reshape(B, S, h, d_k).transpose(0, 2, 1, 3)
    s = jnp.einsum("bhqd,bhkd->bhqk", Q, K) / math.sqrt(d_k)
    s = jnp.where(mask[:, None, :, :] == 0, -1e9, s)
    a = jax.nn.softmax(s, axis=-1)
    x = jnp.einsum("bhqk,bhkd->bhqd", a, V)
    x = x.transpose(0, 2, 1, 3).reshape(B, S, D)
    return x @ wo + bo[0], a


if __name__ == "__main__":
    B, S, D, H = 2, 8, 32, 4   # batch, seq, d_model, heads
    key = jax.random.PRNGKey(0)
    keys = jax.random.split(key, 12)

    q = jax.random.normal(keys[0], (B, S, D), jnp.float32)
    k = jax.random.normal(keys[1], (B, S, D), jnp.float32)
    v = jax.random.normal(keys[2], (B, S, D), jnp.float32)

    # Causal mask (1 = keep, 0 = masked), shared across the batch -> pass as (1, S, S).
    mask = jnp.tril(jnp.ones((S, S), jnp.int32))[None]

    scale = 1.0 / math.sqrt(D)
    params = (
        jax.random.uniform(keys[3], (D, D), jnp.float32, -scale, scale),   # wq (D_in, D_out)
        jax.random.uniform(keys[4], (1, D), jnp.float32, -scale, scale),   # bq
        jax.random.uniform(keys[5], (D, D), jnp.float32, -scale, scale),   # wk
        jax.random.uniform(keys[6], (1, D), jnp.float32, -scale, scale),   # bk
        jax.random.uniform(keys[7], (D, D), jnp.float32, -scale, scale),   # wv
        jax.random.uniform(keys[8], (1, D), jnp.float32, -scale, scale),   # bv
        jax.random.uniform(keys[9], (D, D), jnp.float32, -scale, scale),   # wo
        jax.random.uniform(keys[10], (1, D), jnp.float32, -scale, scale),  # bo
    )

    # Path 1: also export the post-softmax attention map (bf16).
    out, scores = multi_head_attention(q, k, v, mask, params, h=H, return_scores=True)
    out = jax.block_until_ready(out)
    scores = jax.block_until_ready(scores)

    # Path 2: module-equivalent forward (returns only w_o(x); no scores writeback).
    out_fast = jax.block_until_ready(
        multi_head_attention(q, k, v, mask, params, h=H, return_scores=False))

    ref_out, ref_scores = reference_mha(q, k, v, mask, params, h=H)

    # bf16 MXU operands + bf16 scores export -> looser tolerance than exact f32.
    assert jnp.allclose(out, ref_out, atol=2e-2, rtol=2e-2), "output mismatch"
    assert jnp.allclose(out_fast, ref_out, atol=2e-2, rtol=2e-2), "output (fast path) mismatch"
    assert jnp.allclose(scores.astype(jnp.float32), ref_scores, atol=2e-2, rtol=2e-2), \
        "scores mismatch"

    print("KERNEL_OK")
</pallas_src>

<mosaic_0001>
module attributes {stable_mosaic.version = 11 : i64} {
  func.func @_mha_kernel(%arg0: i32, %arg1: memref<1x8x32xf32, #tpu.memory_space<vmem>>, %arg2: memref<1x8x32xf32, #tpu.memory_space<vmem>>, %arg3: memref<1x8x32xf32, #tpu.memory_space<vmem>>, %arg4: memref<1x8x8xbf16, #tpu.memory_space<vmem>>, %arg5: memref<4x32xf32, #tpu.memory_space<vmem>>, %arg6: memref<4x32x32xbf16, #tpu.memory_space<any>>, %arg7: memref<1x8x32xf32, #tpu.memory_space<vmem>>, %arg8: memref<1x4x8x8xbf16, #tpu.memory_space<vmem>>, %arg9: memref<4x32x32xbf16, #tpu.memory_space<vmem>>, %arg10: memref<!tpu.dma_semaphore, #tpu.memory_space<semaphore_mem>>) attributes {dimension_semantics = [#tpu.dimension_semantics<arbitrary>], iteration_bounds = array<i64: 2>, scalar_prefetch = 0 : i64, scratch_operands = 2 : i64, tpu.core_type = #tpu.core_type<tc>, window_params = [{transform_indices = @transform_0, window_bounds = array<i64: 1, 8, 32>}, {transform_indices = @transform_1, window_bounds = array<i64: 1, 8, 32>}, {transform_indices = @transform_2, window_bounds = array<i64: 1, 8, 32>}, {pipeline_mode = #tpu.pipeline_mode<synchronous>, transform_indices = @transform_3, window_bounds = array<i64: 1, 8, 8>}, {pipeline_mode = #tpu.pipeline_mode<synchronous>, transform_indices = @transform_4, window_bounds = array<i64: 4, 32>}, {}, {transform_indices = @transform_6, window_bounds = array<i64: 1, 8, 32>}, {transform_indices = @transform_7, window_bounds = array<i64: 1, 4, 8, 8>}]} {
    %c0_i32 = arith.constant 0 : i32
    %0 = arith.cmpi eq, %arg0, %c0_i32 : i32
    %1 = arith.extui %0 : i1 to i32
    %c0_i32_0 = arith.constant 0 : i32
    %2 = arith.cmpi ne, %1, %c0_i32_0 : i32
    scf.if %2 {
      tpu.enqueue_dma source(%arg6 : memref<4x32x32xbf16, #tpu.memory_space<any>>) target(%arg9 : memref<4x32x32xbf16, #tpu.memory_space<vmem>>) target_semaphore(%arg10 : memref<!tpu.dma_semaphore, #tpu.memory_space<semaphore_mem>>)
      tpu.wait_dma2 semaphore(%arg10 : memref<!tpu.dma_semaphore, #tpu.memory_space<semaphore_mem>>) src(%arg6 : memref<4x32x32xbf16, #tpu.memory_space<any>>) dst(%arg9 : memref<4x32x32xbf16, #tpu.memory_space<vmem>>)
    } else {
    }
    %c0 = arith.constant 0 : index
    %c0_1 = arith.constant 0 : index
    %c0_2 = arith.constant 0 : index
    %3 = vector.load %arg1[%c0, %c0_1, %c0_2] : memref<1x8x32xf32, #tpu.memory_space<vmem>>, vector<1x8x32xf32>
    %4 = vector.shape_cast %3 : vector<1x8x32xf32> to vector<8x32xf32>
    %c0_3 = arith.constant 0 : index
    %c0_4 = arith.constant 0 : index
    %c0_5 = arith.constant 0 : index
    %5 = vector.load %arg2[%c0_3, %c0_4, %c0_5] : memref<1x8x32xf32, #tpu.memory_space<vmem>>, vector<1x8x32xf32>
    %6 = vector.shape_cast %5 : vector<1x8x32xf32> to vector<8x32xf32>
    %c0_6 = arith.constant 0 : index
    %c0_7 = arith.constant 0 : index
    %c0_8 = arith.constant 0 : index
    %7 = vector.load %arg3[%c0_6, %c0_7, %c0_8] : memref<1x8x32xf32, #tpu.memory_space<vmem>>, vector<1x8x32xf32>
    %8 = vector.shape_cast %7 : vector<1x8x32xf32> to vector<8x32xf32>
    %c0_9 = arith.constant 0 : index
    %c0_10 = arith.constant 0 : index
    %c0_11 = arith.constant 0 : index
    %9 = vector.load %arg4[%c0_9, %c0_10, %c0_11] : memref<1x8x8xbf16, #tpu.memory_space<vmem>>, vector<1x8x8xbf16>
    %10 = vector.shape_cast %9 : vector<1x8x8xbf16> to vector<8x8xbf16>
    %11 = arith.extf %10 : vector<8x8xbf16> to vector<8x8xf32>
    %c0_12 = arith.constant 0 : index
    %c0_13 = arith.constant 0 : index
    %12 = vector.load %arg5[%c0_12, %c0_13] : memref<4x32xf32, #tpu.memory_space<vmem>>, vector<4x32xf32>
    %13 = vector.extract_strided_slice %12 {offsets = [0, 0], sizes = [1, 32], strides = [1, 1]} : vector<4x32xf32> to vector<1x32xf32>
    %14 = vector.extract_strided_slice %12 {offsets = [1, 0], sizes = [1, 32], strides = [1, 1]} : vector<4x32xf32> to vector<1x32xf32>
    %15 = vector.extract_strided_slice %12 {offsets = [2, 0], sizes = [1, 32], strides = [1, 1]} : vector<4x32xf32> to vector<1x32xf32>
    %16 = vector.extract_strided_slice %12 {offsets = [3, 0], sizes = [1, 32], strides = [1, 1]} : vector<4x32xf32> to vector<1x32xf32>
    %c0_14 = arith.constant 0 : index
    %c0_15 = arith.constant 0 : index
    %c0_16 = arith.constant 0 : index
    %17 = vector.load %arg9[%c0_14, %c0_15, %c0_16] : memref<4x32x32xbf16, #tpu.memory_space<vmem>>, vector<1x32x32xbf16>
    %18 = vector.shape_cast %17 : vector<1x32x32xbf16> to vector<32x32xbf16>
    %c1 = arith.constant 1 : index
    %c0_17 = arith.constant 0 : index
    %c0_18 = arith.constant 0 : index
    %19 = vector.load %arg9[%c1, %c0_17, %c0_18] : memref<4x32x32xbf16, #tpu.memory_space<vmem>>, vector<1x32x32xbf16>
    %20 = vector.shape_cast %19 : vector<1x32x32xbf16> to vector<32x32xbf16>
    %c2 = arith.constant 2 : index
    %c0_19 = arith.constant 0 : index
    %c0_20 = arith.constant 0 : index
    %21 = vector.load %arg9[%c2, %c0_19, %c0_20] : memref<4x32x32xbf16, #tpu.memory_space<vmem>>, vector<1x32x32xbf16>
    %22 = vector.shape_cast %21 : vector<1x32x32xbf16> to vector<32x32xbf16>
    %c3 = arith.constant 3 : index
    %c0_21 = arith.constant 0 : index
    %c0_22 = arith.constant 0 : index
    %23 = vector.load %arg9[%c3, %c0_21, %c0_22] : memref<4x32x32xbf16, #tpu.memory_space<vmem>>, vector<1x32x32xbf16>
    %24 = vector.shape_cast %23 : vector<1x32x32xbf16> to vector<32x32xbf16>
    %25 = arith.truncf %4 : vector<8x32xf32> to vector<8x32xbf16>
    %cst = arith.constant dense<0.000000e+00> : vector<8x32xf32>
    %26 = tpu.matmul %25, %18, %cst {dimension_numbers = #tpu.dot_dimension_numbers<[1], [0], [0], [1], [0, 0, 1, 1], [], []>} : vector<8x32xbf16>, vector<32x32xbf16>, vector<8x32xf32> -> vector<8x32xf32>
    %27 = vector.broadcast %13 : vector<1x32xf32> to vector<8x32xf32>
    %28 = arith.addf %26, %27 : vector<8x32xf32>
    %cst_23 = arith.constant 0.353553385 : f32
    %29 = vector.broadcast %cst_23 : f32 to vector<8x32xf32>
    %30 = arith.mulf %28, %29 : vector<8x32xf32>
    %31 = arith.truncf %30 : vector<8x32xf32> to vector<8x32xbf16>
    %32 = arith.truncf %6 : vector<8x32xf32> to vector<8x32xbf16>
    %cst_24 = arith.constant dense<0.000000e+00> : vector<8x32xf32>
    %33 = tpu.matmul %32, %20, %cst_24 {dimension_numbers = #tpu.dot_dimension_numbers<[1], [0], [0], [1], [0, 0, 1, 1], [], []>} : vector<8x32xbf16>, vector<32x32xbf16>, vector<8x32xf32> -> vector<8x32xf32>
    %34 = vector.broadcast %14 : vector<1x32xf32> to vector<8x32xf32>
    %35 = arith.addf %33, %34 : vector<8x32xf32>
    %36 = arith.truncf %35 : vector<8x32xf32> to vector<8x32xbf16>
    %37 = arith.truncf %8 : vector<8x32xf32> to vector<8x32xbf16>
    %cst_25 = arith.constant dense<0.000000e+00> : vector<8x32xf32>
    %38 = tpu.matmul %37, %22, %cst_25 {dimension_numbers = #tpu.dot_dimension_numbers<[1], [0], [0], [1], [0, 0, 1, 1], [], []>} : vector<8x32xbf16>, vector<32x32xbf16>, vector<8x32xf32> -> vector<8x32xf32>
    %39 = vector.broadcast %15 : vector<1x32xf32> to vector<8x32xf32>
    %40 = arith.addf %38, %39 : vector<8x32xf32>
    %41 = arith.truncf %40 : vector<8x32xf32> to vector<8x32xbf16>
    %42 = vector.extract_strided_slice %31 {offsets = [0, 0], sizes = [8, 8], strides = [1, 1]} : vector<8x32xbf16> to vector<8x8xbf16>
    %43 = vector.extract_strided_slice %31 {offsets = [0, 8], sizes = [8, 8], strides = [1, 1]} : vector<8x32xbf16> to vector<8x8xbf16>
    %44 = vector.extract_strided_slice %31 {offsets = [0, 16], sizes = [8, 8], strides = [1, 1]} : vector<8x32xbf16> to vector<8x8xbf16>
    %45 = vector.extract_strided_slice %31 {offsets = [0, 24], sizes = [8, 8], strides = [1, 1]} : vector<8x32xbf16> to vector<8x8xbf16>
    %46 = vector.shape_cast %42 : vector<8x8xbf16> to vector<1x8x8xbf16>
    %47 = vector.shape_cast %43 : vector<8x8xbf16> to vector<1x8x8xbf16>
    %48 = vector.shape_cast %44 : vector<8x8xbf16> to vector<1x8x8xbf16>
    %49 = vector.shape_cast %45 : vector<8x8xbf16> to vector<1x8x8xbf16>
    %50 = tpu.concatenate %46, %47, %48, %49 in 0 : vector<1x8x8xbf16>, vector<1x8x8xbf16>, vector<1x8x8xbf16>, vector<1x8x8xbf16> -> vector<4x8x8xbf16>
    %51 = vector.extract_strided_slice %36 {offsets = [0, 0], sizes = [8, 8], strides = [1, 1]} : vector<8x32xbf16> to vector<8x8xbf16>
    %52 = vector.extract_strided_slice %36 {offsets = [0, 8], sizes = [8, 8], strides = [1, 1]} : vector<8x32xbf16> to vector<8x8xbf16>
    %53 = vector.extract_strided_slice %36 {offsets = [0, 16], sizes = [8, 8], strides = [1, 1]} : vector<8x32xbf16> to vector<8x8xbf16>
    %54 = vector.extract_strided_slice %36 {offsets = [0, 24], sizes = [8, 8], strides = [1, 1]} : vector<8x32xbf16> to vector<8x8xbf16>
    %55 = vector.shape_cast %51 : vector<8x8xbf16> to vector<1x8x8xbf16>
    %56 = vector.shape_cast %52 : vector<8x8xbf16> to vector<1x8x8xbf16>
    %57 = vector.shape_cast %53 : vector<8x8xbf16> to vector<1x8x8xbf16>
    %58 = vector.shape_cast %54 : vector<8x8xbf16> to vector<1x8x8xbf16>
    %59 = tpu.concatenate %55, %56, %57, %58 in 0 : vector<1x8x8xbf16>, vector<1x8x8xbf16>, vector<1x8x8xbf16>, vector<1x8x8xbf16> -> vector<4x8x8xbf16>
    %60 = vector.extract_strided_slice %41 {offsets = [0, 0], sizes = [8, 8], strides = [1, 1]} : vector<8x32xbf16> to vector<8x8xbf16>
    %61 = vector.extract_strided_slice %41 {offsets = [0, 8], sizes = [8, 8], strides = [1, 1]} : vector<8x32xbf16> to vector<8x8xbf16>
    %62 = vector.extract_strided_slice %41 {offsets = [0, 16], sizes = [8, 8], strides = [1, 1]} : vector<8x32xbf16> to vector<8x8xbf16>
    %63 = vector.extract_strided_slice %41 {offsets = [0, 24], sizes = [8, 8], strides = [1, 1]} : vector<8x32xbf16> to vector<8x8xbf16>
    %64 = vector.shape_cast %60 : vector<8x8xbf16> to vector<1x8x8xbf16>
    %65 = vector.shape_cast %61 : vector<8x8xbf16> to vector<1x8x8xbf16>
    %66 = vector.shape_cast %62 : vector<8x8xbf16> to vector<1x8x8xbf16>
    %67 = vector.shape_cast %63 : vector<8x8xbf16> to vector<1x8x8xbf16>
    %68 = tpu.concatenate %64, %65, %66, %67 in 0 : vector<1x8x8xbf16>, vector<1x8x8xbf16>, vector<1x8x8xbf16>, vector<1x8x8xbf16> -> vector<4x8x8xbf16>
    "tpu.trace_start"() <{level = 10 : i32, message = "hqd,hkd->hqk"}> : () -> ()
    %cst_26 = arith.constant dense<0.000000e+00> : vector<4x8x8xf32>
    %69 = tpu.matmul %50, %59, %cst_26 {dimension_numbers = #tpu.dot_dimension_numbers<[2], [2], [1], [1], [0, 0, 0, 1, 1, 1], [0], [0]>} : vector<4x8x8xbf16>, vector<4x8x8xbf16>, vector<4x8x8xf32> -> vector<4x8x8xf32>
    "tpu.trace_stop"() : () -> ()
    %70 = vector.shape_cast %11 : vector<8x8xf32> to vector<1x8x8xf32>
    %71 = vector.broadcast %70 : vector<1x8x8xf32> to vector<4x8x8xf32>
    %72 = arith.addf %69, %71 : vector<4x8x8xf32>
    %cst_27 = arith.constant dense<0xFF800000> : vector<4x8xf32>
    %73 = vector.multi_reduction <maximumf>, %72, %cst_27 [2] : vector<4x8x8xf32> to vector<4x8xf32>
    %74 = vector.shape_cast %73 : vector<4x8xf32> to vector<4x8x1xf32>
    %75 = vector.broadcast %74 : vector<4x8x1xf32> to vector<4x8x8xf32>
    %76 = arith.subf %72, %75 : vector<4x8x8xf32>
    %77 = math.exp %76 : vector<4x8x8xf32>
    %cst_28 = arith.constant dense<0.000000e+00> : vector<4x8xf32>
    %78 = vector.multi_reduction <add>, %77, %cst_28 [2] : vector<4x8x8xf32> to vector<4x8xf32>
    %79 = vector.shape_cast %78 : vector<4x8xf32> to vector<4x8x1xf32>
    %80 = vector.broadcast %79 : vector<4x8x1xf32> to vector<4x8x8xf32>
    %81 = arith.divf %77, %80 : vector<4x8x8xf32>
    %82 = arith.truncf %81 : vector<4x8x8xf32> to vector<4x8x8xbf16>
    %c0_29 = arith.constant 0 : index
    %c0_30 = arith.constant 0 : index
    %c0_31 = arith.constant 0 : index
    %c0_32 = arith.constant 0 : index
    %83 = vector.load %arg8[%c0_29, %c0_30, %c0_31, %c0_32] : memref<1x4x8x8xbf16, #tpu.memory_space<vmem>>, vector<1x4x8x8xbf16>
    %84 = vector.shape_cast %83 : vector<1x4x8x8xbf16> to vector<4x8x8xbf16>
    %85 = vector.shape_cast %82 : vector<4x8x8xbf16> to vector<1x4x8x8xbf16>
    tpu.vector_store %arg8[%c0_29, %c0_30, %c0_31, %c0_32], %85 {strides = array<i32>} : memref<1x4x8x8xbf16, #tpu.memory_space<vmem>>, vector<1x4x8x8xbf16>,
    %86 = arith.truncf %81 : vector<4x8x8xf32> to vector<4x8x8xbf16>
    "tpu.trace_start"() <{level = 10 : i32, message = "hqk,hkd->hqd"}> : () -> ()
    %cst_33 = arith.constant dense<0.000000e+00> : vector<4x8x8xf32>
    %87 = tpu.matmul %86, %68, %cst_33 {dimension_numbers = #tpu.dot_dimension_numbers<[2], [1], [1], [2], [0, 0, 0, 1, 1, 2], [0], [0]>} : vector<4x8x8xbf16>, vector<4x8x8xbf16>, vector<4x8x8xf32> -> vector<4x8x8xf32>
    "tpu.trace_stop"() : () -> ()
    %88 = arith.truncf %87 : vector<4x8x8xf32> to vector<4x8x8xbf16>
    %89 = vector.extract_strided_slice %88 {offsets = [0, 0, 0], sizes = [1, 8, 8], strides = [1, 1, 1]} : vector<4x8x8xbf16> to vector<1x8x8xbf16>
    %90 = vector.shape_cast %89 : vector<1x8x8xbf16> to vector<8x8xbf16>
    %91 = vector.extract_strided_slice %88 {offsets = [1, 0, 0], sizes = [1, 8, 8], strides = [1, 1, 1]} : vector<4x8x8xbf16> to vector<1x8x8xbf16>
    %92 = vector.shape_cast %91 : vector<1x8x8xbf16> to vector<8x8xbf16>
    %93 = vector.extract_strided_slice %88 {offsets = [2, 0, 0], sizes = [1, 8, 8], strides = [1, 1, 1]} : vector<4x8x8xbf16> to vector<1x8x8xbf16>
    %94 = vector.shape_cast %93 : vector<1x8x8xbf16> to vector<8x8xbf16>
    %95 = vector.extract_strided_slice %88 {offsets = [3, 0, 0], sizes = [1, 8, 8], strides = [1, 1, 1]} : vector<4x8x8xbf16> to vector<1x8x8xbf16>
    %96 = vector.shape_cast %95 : vector<1x8x8xbf16> to vector<8x8xbf16>
    %97 = tpu.concatenate %90, %92, %94, %96 in 1 : vector<8x8xbf16>, vector<8x8xbf16>, vector<8x8xbf16>, vector<8x8xbf16> -> vector<8x32xbf16>
    %cst_34 = arith.constant dense<0.000000e+00> : vector<8x32xf32>
    %98 = tpu.matmul %97, %24, %cst_34 {dimension_numbers = #tpu.dot_dimension_numbers<[1], [0], [0], [1], [0, 0, 1, 1], [], []>} : vector<8x32xbf16>, vector<32x32xbf16>, vector<8x32xf32> -> vector<8x32xf32>
    %99 = vector.broadcast %16 : vector<1x32xf32> to vector<8x32xf32>
    %100 = arith.addf %98, %99 : vector<8x32xf32>
    %c0_35 = arith.constant 0 : index
    %c0_36 = arith.constant 0 : index
    %c0_37 = arith.constant 0 : index
    %101 = vector.load %arg7[%c0_35, %c0_36, %c0_37] : memref<1x8x32xf32, #tpu.memory_space<vmem>>, vector<1x8x32xf32>
    %102 = vector.shape_cast %101 : vector<1x8x32xf32> to vector<8x32xf32>
    %103 = vector.shape_cast %100 : vector<8x32xf32> to vector<1x8x32xf32>
    tpu.vector_store %arg7[%c0_35, %c0_36, %c0_37], %103 {strides = array<i32>} : memref<1x8x32xf32, #tpu.memory_space<vmem>>, vector<1x8x32xf32>,
    return
  }
  func.func @transform_0(%arg0: i32) -> (i32, i32, i32) {
    %c0_i32 = arith.constant 0 : i32
    %c0_i32_0 = arith.constant 0 : i32
    %c0_i32_1 = arith.constant 0 : i32
    return %arg0, %c0_i32, %c0_i32_0 : i32, i32, i32
  }
  func.func @transform_1(%arg0: i32) -> (i32, i32, i32) {
    %c0_i32 = arith.constant 0 : i32
    %c0_i32_0 = arith.constant 0 : i32
    %c0_i32_1 = arith.constant 0 : i32
    return %arg0, %c0_i32, %c0_i32_0 : i32, i32, i32
  }
  func.func @transform_2(%arg0: i32) -> (i32, i32, i32) {
    %c0_i32 = arith.constant 0 : i32
    %c0_i32_0 = arith.constant 0 : i32
    %c0_i32_1 = arith.constant 0 : i32
    return %arg0, %c0_i32, %c0_i32_0 : i32, i32, i32
  }
  func.func @transform_3(%arg0: i32) -> (i32, i32, i32) {
    %c0_i32 = arith.constant 0 : i32
    %c0_i32_0 = arith.constant 0 : i32
    %c0_i32_1 = arith.constant 0 : i32
    %c0_i32_2 = arith.constant 0 : i32
    return %c0_i32, %c0_i32_0, %c0_i32_1 : i32, i32, i32
  }
  func.func @transform_4(%arg0: i32) -> (i32, i32) {
    %c0_i32 = arith.constant 0 : i32
    %c0_i32_0 = arith.constant 0 : i32
    %c0_i32_1 = arith.constant 0 : i32
    return %c0_i32, %c0_i32_0 : i32, i32
  }
  func.func @transform_6(%arg0: i32) -> (i32, i32, i32) {
    %c0_i32 = arith.constant 0 : i32
    %c0_i32_0 = arith.constant 0 : i32
    %c0_i32_1 = arith.constant 0 : i32
    return %arg0, %c0_i32, %c0_i32_0 : i32, i32, i32
  }
  func.func @transform_7(%arg0: i32) -> (i32, i32, i32, i32) {
    %c0_i32 = arith.constant 0 : i32
    %c0_i32_0 = arith.constant 0 : i32
    %c0_i32_1 = arith.constant 0 : i32
    %c0_i32_2 = arith.constant 0 : i32
    return %arg0, %c0_i32, %c0_i32_0, %c0_i32_1 : i32, i32, i32, i32
  }
}

</mosaic_0001>

<bundles_post_ra>
// kernel: tpu_custom_call.1
= control target key start
LH: loop header
LB: loop body
LE: loop exit
PB: predicated region body
PF: predicated region fallthrough
CT: control target
= control target key end

     0   :  { %s2169_s0 = inlined_call_operand.hbm [shape: f32[2,8,32], index: 0, kind: input, shape index: {}]   ;;  %s2170_s1 = inlined_call_operand.hbm [shape: f32[2,8,32], index: 1, kind: input, shape index: {}]   ;;  %s2171_s2 = inlined_call_operand.hbm [shape: f32[2,8,32], index: 2, kind: input, shape index: {}]   ;;  %s2172_s3 = inlined_call_operand.vmem [shape: bf16[1,8,8], index: 3, kind: input, shape index: {}]   ;;  %s2173_s4 = inlined_call_operand.vmem [shape: f32[4,32], index: 4, kind: input, shape index: {}]   ;;  %s2174_s5 = inlined_call_operand.hbm [shape: bf16[4,32,32], index: 5, kind: input, shape index: {}]   ;;  %s2175_s6 = inlined_call_operand.hbm [shape: f32[2,8,32], index: 6, kind: output, shape index: {0}]   ;;  %s2176_s7 = inlined_call_operand.hbm [shape: bf16[2,4,8,8], index: 7, kind: output, shape index: {1}]  }
   0x1   :  { %2187 = sst [smem:[#allocation26_spill]] %s2170_s1 }
   0x2   :  { %13 = vsyncpa [#allocation5], 0 }
   0x3   :  { %15 = vsyncpa [#allocation5 + $0x1], 0 }
   0x4   :  { %16 = vsyncpa [#allocation8], 0 }
   0x5   :  { %18 = vsyncpa [#allocation8 + $0x1], 0 }
   0x6   :  { %19 = vsyncpa [#allocation6], 0 }
   0x7   :  { %21 = vsyncpa [#allocation6 + $0x1], 0 }
   0x8   :  { %22 = vsyncpa [#allocation12], 0 }
   0x9   :  { %24 = vsyncpa [#allocation12 + $0x1], 0  ;;  %s1753_s24 = smov 0   ;;  %s1755_s25 = smov 0  }
   0xa   :  { %s1757_s26 = smov 0   ;;  %s1759_s27 = smov 0  }
   0xb LB: > { %2188 = sst [smem:[#allocation22_spill]] %s1691_s26  ;;  %s1774_s28 = sadd.s32 4294967295, %s1695_s27   ;;  %s1695_s27 = sphi %s1759_s27, %s2214_s27   ;;  %s1691_s26 = sphi %s1757_s26, %s2216_s26   ;;  %s1687_s25 = sphi %s1755_s25, %s2218_s25   ;;  %s1683_s24 = sphi %s1753_s24, %s2217_s24  }
   0xc   : > { %2189 = sst [smem:[#allocation23_spill]] %s1695_s27  ;;  %s1236_s29 = sadd.s32 4294967294, %s1695_s27  }
   0xd   : > { %s1778_s30 = sadd.s32 1, %s1695_s27   ;;  %s37_s8 = sadd.s32 1, %s1691_s26 }
   0xe   : > { %2190 = sst [smem:[#allocation24_spill]] %s1778_s30  ;;  %s34_s9 = ssub.s32 %s1695_s27, %s1778_s30 }
   0xf   : > { %p44_p0 = scmp.ne.s32.totalorder %s1691_s26, %s1687_s25  ;;  %p35_p1 = scmp.eq.s32.totalorder %s34_s9, 0 }
  0x10   : > { %p45_p2 = scmp.eq.s32.totalorder %s1695_s27, 0  ;;  %p50_p3 = scmp.ne.s32.totalorder %s1687_s25, %s1683_s24 }
  0x11   : > { %p2178_p4 = scmp.eq.s32.totalorder %s1774_s28, 0  ;;  %p168_p7 = scmp.eq.s32.totalorder %s1774_s28, 1 }
  0x12   : > { %s1790_s10 = scalar_select %p35_p1, %s1691_s26, %s37_s8  }
  0x13   : > { %p46_p5 = por %p45_p2, %p44_p0  ;;  %p1794_p6 = por %p2178_p4, %p50_p3 }
  0x14   : > { %2191 = sst [smem:[#allocation25_spill]] %s1790_s10  ;;  %p174_p8 = scmp.eq.s32.totalorder %s1236_s29, 1 }
  0x15   : > { %s2192_s11 = scalar_select %p1794_p6, 1, 0 }
  0x16   : > { %p1411_p10 = scmp.lt.s32.totalorder %s1695_s27, 2  ;;  %p1801_p11 = por %p168_p7, %p44_p0 }
  0x17   : > { %p1805_p12 = por %p174_p8, %p50_p3  ;;  %s2177_s14 = sand.u32 1, %s1691_s26  }
  0x18   : > { %s2193_s12 = scalar_select %p1801_p11, 1, 0 }
  0x19   : > { %s2194_s13 = scalar_select %p1805_p12, 1, 0 }
  0x1a   : > { %s1811_s15 = sshll.u32 %s1695_s27, 7  ;;  %s1815_s16 = sshll.u32 %s2177_s14, 3 }
  0x1b   : > { %p1817_p13 = pnand %p1411_p10, %p46_p5  ;;  %s244_s18 = sand.u32 1, %s1695_s27  }
  0x1c   : > { %s2196_s1 = sld [smem:[#allocation26_spill]]  ;;  %s248_s22 = scalar_lea.vmem [#allocation7], %s1815_s16 }
  0x1d   : > { %s2195_s17 = scalar_select %p1817_p13, 1, 0 }
  0x1e   : > { %s255_s23 = sshll.u32 %s248_s22, 4  ;;  %s1832_s29 = scalar_lea.sflag [#allocation8], %s244_s18  ;;  %s1829_s23 = int_to_ptr.vmem [resolvable:$true] %s255_s23 }
  0x1f   : > { %p1838_p2 = pneg %p1817_p13 }
  0x22   : > { %s1826_s21 = scalar_lea.hbm %s2196_s1, %s1811_s15  ;;  %s1478_s22 = scalar_lea.hbm %s2196_s1, 256 }
  0x23   : > { %s1473_s8 = scalar_lea.hbm %s1826_s21, 128  ;;  %p1479_p7 = scmp.lt.u32.totalorder %s1826_s21, %s2196_s1 }
  0x24   : > { %p1474_p1 = scmp.ne.s32.totalorder %s1826_s21, %s1473_s8  ;;  %p1480_p8 = scmp.lt.u32.totalorder %s1478_s22, %s1473_s8 }
  0x25   : > { %p1482_p9 = scmp.lt.u32.totalorder %s1473_s8, %s1826_s21 }
  0x26   : > { %p1476_p3 = pnand %p1838_p2, %p1474_p1  ;;  %p1481_p10 = por %p1480_p8, %p1479_p7 }
  0x28   : > { %p1477_p5 = pneg %p1476_p3  ;;  %p1483_p4 = por %p1482_p9, %p1481_p10 }
  0x2a   : > { %p1484_p0 = pnand %p1483_p4, %p1477_p5 }
  0x2c   : > { %1487 = shalt.err (!%p1484_p0)
}
  0x2d   : > { %s1488_s18 = scalar_lea.vmem %s1829_s23, 128  ;;  %s1697_s19 = smov [#allocation7]  }
  0x2e   : > { %p1489_p1 = scmp.ne.s32.totalorder %s1829_s23, %s1488_s18  ;;  %s1493_s20 = sshll.u32 %s1697_s19, 4  ;;  %s1494_s20 = int_to_ptr.vmem [resolvable:$false] %s1493_s20 }
  0x2f   : > { %s1495_s10 = scalar_lea.vmem %s1494_s20, 256  ;;  %p1496_p11 = scmp.lt.s32.totalorder %s1829_s23, %s1494_s20 }
  0x30   : > { %p1491_p3 = pnand %p1489_p1, %p1838_p2  ;;  %p1497_p6 = scmp.lt.s32.totalorder %s1495_s10, %s1488_s18 }
  0x32   : > { %p1492_p12 = pneg %p1491_p3  ;;  %p1498_p7 = por %p1497_p6, %p1496_p11 }
  0x34   : > { %p1499_p8 = pnand %p1498_p7, %p1492_p12 }
  0x36   : > { %1502 = shalt.err (!%p1499_p8)
}
  0x37   : > { %1400 = dma.hbm_to_vmem [thread:$0]  (!%p1817_p13), %s1826_s21, 128, %s1829_s23, %s1832_s29  }
  0x38   : > { %p278_p4 = scmp.lt.s32.totalorder %s1695_s27, 3  ;;  %s1867_s22 = scalar_lea.hbm %s2169_s0, %s1811_s15 }
  0x39   : > { %p2198_p6 = scmp.ge.s32.totalorder %s1695_s27, 1  ;;  %s230_s19 = scalar_lea.vmem [#allocation4], %s1815_s16 }
  0x3a   : > { %s237_s20 = sshll.u32 %s230_s19, 4  ;;  %s2200_s10 = sand.u32 1, %s1691_s26   ;;  %s238_s20 = int_to_ptr.vmem [resolvable:$true] %s237_s20 }
  0x3b   : > { %p1871_p9 = pnand %p2198_p6, %p278_p4  ;;  %s227_s21 = scalar_lea.sflag [#allocation5], %s2200_s10 }
  0x3c   : > { %s1503_s23 = scalar_lea.hbm %s1867_s22, 128  ;;  %s1508_s1 = scalar_lea.hbm %s2169_s0, 256 }
  0x3d   : > { %s2199_s18 = scalar_select %p1871_p9, 1, 0 }
  0x3e   : > { %p1504_p11 = scmp.ne.s32.totalorder %s1867_s22, %s1503_s23  ;;  %p1509_p5 = scmp.lt.u32.totalorder %s1867_s22, %s2169_s0 }
  0x3f   : > { %p1510_p10 = scmp.lt.u32.totalorder %s1508_s1, %s1503_s23  ;;  %p1512_p3 = scmp.lt.u32.totalorder %s1503_s23, %s1867_s22 }
  0x40   : > { %p1506_p12 = pnand %p1504_p11, %p1838_p2 }
  0x41   : > { %p1511_p1 = por %p1510_p10, %p1509_p5 }
  0x42   : > { %p1507_p0 = pneg %p1506_p12 }
  0x43   : > { %p1513_p7 = por %p1512_p3, %p1511_p1 }
  0x45   : > { %p1514_p8 = pnand %p1513_p7, %p1507_p0 }
  0x47   : > { %1517 = shalt.err (!%p1514_p8)
}
  0x48   : > { %s1518_s19 = scalar_lea.vmem %s238_s20, 128  ;;  %s1698_s10 = smov [#allocation4]  }
  0x49   : > { %p1519_p4 = scmp.ne.s32.totalorder %s238_s20, %s1518_s19  ;;  %s1523_s26 = sshll.u32 %s1698_s10, 4  ;;  %s1524_s26 = int_to_ptr.vmem [resolvable:$false] %s1523_s26 }
  0x4a   : > { %s1525_s14 = scalar_lea.vmem %s1524_s26, 256  ;;  %p1526_p12 = scmp.lt.s32.totalorder %s238_s20, %s1524_s26 }
  0x4b   : > { %p1521_p6 = pnand %p1519_p4, %p1838_p2  ;;  %p1527_p9 = scmp.lt.s32.totalorder %s1525_s14, %s1518_s19 }
  0x4d   : > { %p1522_p11 = pneg %p1521_p6  ;;  %p1528_p13 = por %p1527_p9, %p1526_p12 }
  0x4f   : > { %p1529_p5 = pnand %p1528_p13, %p1522_p11 }
  0x51   : > { %1532 = shalt.err (!%p1529_p5)
}
  0x52   : > { %p2201_p10 = scmp.ne.s32.totalorder %s2195_s17, 0  ;;  %s1899_s30 = scalar_lea.hbm %s2171_s2, %s1811_s15 }
  0x53   : > { %s266_s26 = scalar_lea.vmem [#allocation9], %s1815_s16  ;;  %s1533_s8 = scalar_lea.hbm %s1899_s30, 128 }
  0x54   : > { %1397 = dma.hbm_to_vmem [thread:$0]  (!%p2201_p10), %s1867_s22, 128, %s238_s20, %s227_s21  }
  0x55   : > { %s273_s23 = sshll.u32 %s266_s26, 4  ;;  %p1534_p13 = scmp.ne.s32.totalorder %s1899_s30, %s1533_s8  ;;  %s274_s23 = int_to_ptr.vmem [resolvable:$true] %s273_s23 }
  0x56   : > { %s1538_s22 = scalar_lea.hbm %s2171_s2, 256  ;;  %p1539_p1 = scmp.lt.u32.totalorder %s1899_s30, %s2171_s2 }
  0x57   : > { %p1536_p9 = pnand %p1534_p13, %p1838_p2  ;;  %p1540_p3 = scmp.lt.u32.totalorder %s1538_s22, %s1533_s8 }
  0x58   : > { %p1542_p8 = scmp.lt.u32.totalorder %s1533_s8, %s1899_s30 }
  0x59   : > { %p1537_p0 = pneg %p1536_p9  ;;  %p1541_p7 = por %p1540_p3, %p1539_p1 }
  0x5b   : > { %p1543_p4 = por %p1542_p8, %p1541_p7 }
  0x5d   : > { %p1544_p6 = pnand %p1543_p4, %p1537_p0 }
  0x5f   : > { %1547 = shalt.err (!%p1544_p6)
}
  0x60   : > { %s1548_s15 = scalar_lea.vmem %s274_s23, 128  ;;  %s1699_s16 = smov [#allocation9]  }
  0x61   : > { %p1549_p11 = scmp.ne.s32.totalorder %s274_s23, %s1548_s15  ;;  %s1553_s14 = sshll.u32 %s1699_s16, 4  ;;  %s1554_s14 = int_to_ptr.vmem [resolvable:$false] %s1553_s14 }
  0x62   : > { %s1555_s1 = scalar_lea.vmem %s1554_s14, 256  ;;  %p1556_p13 = scmp.lt.s32.totalorder %s274_s23, %s1554_s14 }
  0x63   : > { %p1551_p12 = pnand %p1549_p11, %p1838_p2  ;;  %p1557_p9 = scmp.lt.s32.totalorder %s1555_s1, %s1548_s15 }
  0x65   : > { %p1552_p5 = pneg %p1551_p12  ;;  %p1558_p10 = por %p1557_p9, %p1556_p13 }
  0x67   : > { %p1559_p1 = pnand %p1558_p10, %p1552_p5 }
  0x69   : > { %1562 = shalt.err (!%p1559_p1)
}
  0x6a   : > { %p2202_p3 = scmp.ne.s32.totalorder %s2195_s17, 0  ;;  %p2203_p0 = scmp.ne.s32.totalorder %s2199_s18, 0 }
  0x6b   : > { %s1923_s9 = sand.u32 (!%p2203_p0), 1, %s1687_s25   ;;  %p2204_p2 = scmp.ne.s32.totalorder (!%p2203_p0), %s2192_s11, 0 }
  0x6c   : > { %1403 = dma.hbm_to_vmem [thread:$0]  (!%p2202_p3), %s1899_s30, 128, %s274_s23, %s1832_s29  }
  0x6d   : > { %282 = sbr.rel (%p2203_p0) target bundleno = 1592 (0x638), region = 40  ;;  %s1926_s27 = sshll.u32 (!%p2203_p0), %s1923_s9, 3 }
  0x6e   : > { %s285_s26 = scalar_lea.sflag (!%p2203_p0), [#allocation5], %s1923_s9  ;;  %s288_s8 = scalar_lea.vmem (!%p2203_p0), [#allocation4], %s1926_s27 }
  0x74   : > { %1662 = dma.done.wait (%p2204_p2), %s285_s26, 128  }
  0x75   : > { %1664 = vsyncadd (%p2204_p2), %s285_s26, 4294967168  ;;  %s293_s17 = sand.u32 1, %s1774_s28   ;;  %s297_s18 = scalar_lea.vmem [#allocation7], %s1926_s27 }
  0x76   : > { %s294_s29 = scalar_lea.sflag [#allocation8], %s293_s17 }
  0x77   : > { %1666 = dma.done.wait (%p2204_p2), %s294_s29, 256  }
  0x78   : > { %1668 = vsyncadd (%p2204_p2), %s294_s29, 4294967040  ;;  %s1250_s30 = sshll.u32 %s1923_s9, 4  ;;  %s1700_s23 = smov [#allocation2]  }
  0x79   : > { %s362_s19 = sshll.u32 %s1700_s23, 4  ;;  %s1563_s20 = scalar_lea.hbm %s2174_s5, 1024  ;;  %s363_s19 = int_to_ptr.vmem [resolvable:$true] %s362_s19 }
  0x7a   : > { %p1564_p10 = scmp.ne.s32.totalorder %s2174_s5, %s1563_s20  ;;  %p2205_p7 = scmp.eq.s32.totalorder %s1774_s28, 0 }
  0x7b   : > { %p1569_p6 = scmp.lt.u32.totalorder %s1563_s20, %s2174_s5 }
  0x7c   : > { %p1565_p8 = pnand %p1564_p10, %p2205_p7 }
  0x7e   : > { %p1566_p4 = pneg %p1565_p8 }
  0x80   : > { %p1571_p11 = pnand %p1569_p6, %p1566_p4 }
  0x82   : > { %1574 = shalt.err (!%p1571_p11)  }
  0x83   : > { %s1575_s14 = scalar_lea.vmem %s363_s19, 1024  ;;  %p2206_p5 = pmov %p2205_p7 }
  0x84   : > { %p1576_p12 = scmp.ne.s32.totalorder %s363_s19, %s1575_s14  ;;  %p1582_p1 = scmp.lt.s32.totalorder %s363_s19, %s363_s19 }
  0x85   : > { %p1583_p3 = scmp.lt.s32.totalorder %s1575_s14, %s1575_s14 }
  0x86   : > { %p1577_p13 = pnand %p1576_p12, %p2206_p5 }
  0x87   : > { %p1584_p0 = por %p1583_p3, %p1582_p1 }
  0x88   : > { %p1578_p9 = pneg %p1577_p13 }
  0x8a   : > { %p1585_p2 = pnand %p1584_p0, %p1578_p9 }
  0x8c   : > { %1588 = shalt.err (!%p1585_p2)  }
  0x8d   : > { %p2207_p10 = pmov %p2206_p5  ;;  %s306_s17 = scalar_lea.vmem [#allocation9], %s1926_s27 }
  0x8e   : > { %s342_s29 = scalar_lea.vmem [#allocation10], %s1926_s27  ;;  %s1961_s23 = scalar_lea.vmem [#allocation11], %s1250_s30 }
  0x8f   : > { %1388 = dma.hbm_to_vmem [thread:$0]  (%p2207_p10), %s2174_s5, 1024, %s363_s19, [#allocation3] }
  0x90   : > { %p2208_p7 = pmov %p2206_p5 }
  0x91   : > { %p2209_p8 = pmov %p2206_p5 }
  0x92   : > { %1670 = dma.done.wait (%p2208_p7), [#allocation3], 1024 }
  0x93   : > { %1672 = vsyncadd (%p2209_p8), [#allocation3], 4294966272  ;;  %v1701_v0 = vmov 0.0   ;;  %vm1702_vm0 = vmmov 0   ;;  %v377_v1 = vld [vmem:[#allocation2] sm:$0xff]  ;;  %v380_v2 = vld [vmem:[#allocation2 + $0x10] sm:$0xff]  ;;  %v389_v13 = vlaneseq }
  0x94   : > { %1301 = vmatprep.subr.bf16.mxu0 %v1701_v0  ;;  %1309 = vmatprep.subr.bf16.mxu1 %v1701_v0  ;;  %v371_v3 = vld [vmem:[%s288_s8] sm:$0xff]  ;;  %v372_v4 = vld [vmem:[%s297_s18] sm:$0xff]  ;;  %vm393_vm1 = vcmask 261120   ;;  %vm558_vm2 = vcmask 64512   ;;  %s1703_s30 = smov 120   ;;  %s1704_s19 = smov 112  }
  0x95   : > { %1305 = vmatprep.mubr.msk.bf16.mxu0 %vm1702_vm0, %v1701_v0  ;;  %1313 = vmatprep.mubr.msk.bf16.mxu1 %vm1702_vm0, %v1701_v0  ;;  %v378_v5 = vld [vmem:[#allocation2 + $0x8] sm:$0xff]  ;;  %v381_v6 = vld [vmem:[#allocation2 + $0x18] sm:$0xff]  ;;  %v388_v7 = vpack.c.bf16 %v371_v3, %v371_v3  ;;  %v439_v8 = vpack.c.bf16 %v372_v4, %v372_v4  ;;  %v383_v9 = vld [vmem:[#allocation2 + $0x20] sm:$0xff]  ;;  %v1994_v14 = vshrl.u32 %v389_v13, 7  ;;  %s1705_s10 = smov 104   ;;  %vm799_vm3 = vcmask 1043456  }
  0x96   : > { %1302 = vmatpush3.bf16.msra.mxu0 %v377_v1  ;;  %1310 = vmatpush3.bf16.msra.mxu1 %v380_v2  ;;  %v373_v10 = vld [vmem:[%s306_s17] sm:$0xff]  ;;  %vm791_vm4 = vcmask 60416   ;;  %s1706_s21 = smov 8   ;;  %s1707_s15 = smov 16   ;;  %vm997_vm5 = vcmask 130048   ;;  %vm1000_vm6 = vcmask 195584  }
  0x97   : > { %1303 = vmatprep.subr.bf16.mxu0 %v1701_v0  ;;  %1311 = vmatprep.subr.bf16.mxu1 %v1701_v0  ;;  %v384_v11 = vld [vmem:[#allocation2 + $0x28] sm:$0xff]  ;;  %v488_v12 = vpack.c.bf16 %v373_v10, %v373_v10  ;;  %v391_v15 = vsub.s32 0, %v1994_v14  ;;  %v442_v16 = vsub.s32 1, %v1994_v14  ;;  %v2001_v17 = vld [vmem:[%s2173_s4] sm:$0xf]  ;;  %v491_v38 = vsub.s32 2, %v1994_v14 }
  0x98   : > { %v374_v52 = vld [vmem:[%s2172_s3] sm:$0xf]  ;;  %s1708_s16 = smov 24   ;;  %s1272_s11 = sshll.u32 %s1774_s28, 8 }
  0x99   : > { %v392_v18 = vrot.slane %v2001_v17, %v391_v15  ;;  %v443_v19 = vrot.slane %v2001_v17, %v442_v16  ;;  %v492_v39 = vrot.slane %v2001_v17, %v491_v38  ;;  %v375_v53 = vunpack.c.l.bf16 %v374_v52  ;;  %s1082_s14 = sshll.u32 %s1961_s23, 4  ;;  %s2086_s17 = scalar_lea.hbm %s2176_s7, %s1272_s11  ;;  %s2088_s14 = int_to_ptr.vmem [resolvable:$true] %s1082_s14 }
  0x9a   : > { %1304 = vmatpush3.bf16.msra.mxu0 %v378_v5  ;;  %1312 = vmatpush3.bf16.msra.mxu1 %v381_v6  ;;  %s1056_s8 = scalar_lea.sflag [#allocation12], %s1923_s9  ;;  %s1589_s18 = scalar_lea.vmem %s2088_s14, 256 }
  0x9b   : > { %1325 = vmatprep.subr.bf16.mxu1 %v1701_v0  ;;  %1317 = vmatprep.subr.bf16.mxu0 %v1701_v0  ;;  %p1590_p4 = scmp.ne.s32.totalorder %s2088_s14, %s1589_s18  ;;  %p2210_p6 = scmp.ne.s32.totalorder %s2193_s12, 0 }
  0x9d   : > { %1306 = vmatmul.mubr.msk.bf16.vlgmr.msra.gmra.mrb[0].mxu0 %vm393_vm1, %v388_v7  ;;  %1314 = vmatmul.mubr.msk.bf16.vlgmr.msra.gmra.mrb[0].mxu1 %vm393_vm1, %v439_v8  ;;  %p1591_p11 = pnand %p1590_p4, %p2210_p6 }
  0x9e   : > { %1327 = vmatprep.mubr.msk.bf16.mxu1 %vm1702_vm0, %v1701_v0  ;;  %1321 = vmatprep.mubr.msk.bf16.mxu0 %vm1702_vm0, %v1701_v0 }
  0x9f   : > { %1318 = vmatpush3.bf16.msra.mxu0 %v383_v9  ;;  %p1592_p12 = pneg %p1591_p11 }
  0xa0   : > { %1319 = vmatprep.subr.bf16.mxu0 %v1701_v0 }
  0xa3   : > { %1320 = vmatpush3.bf16.msra.mxu0 %v384_v11 }
  0xa4   : > { %1331 = vmatprep.subr.bf16.mxu0 %v1701_v0 }
  0xa6   : > { %1322 = vmatmul.mubr.msk.bf16.vlgmr.msra.gmra.mrb[4].mxu0 %vm393_vm1, %v488_v12 }
  0xa7   : > { %1333 = vmatprep.mubr.msk.bf16.mxu0 %vm1702_vm0, %v1701_v0 }
 0x170   : > { %v431_v20 = vpop.f32.mrb[0].mxu0  ;;  %v481_v21 = vpop.f32.mrb[0].mxu1 }
 0x171   : > { %v432_v22 = vadd.f32 %v431_v20, %v392_v18  ;;  %v482_v23 = vadd.f32 %v481_v21, %v443_v19  ;;  %v1307_v24 = vpop.f32.mrb[1].mxu0  ;;  %v1315_v25 = vpop.f32.mrb[1].mxu1 }
 0x172   : > { %v434_v26 = vpop.f32.mrb[2].mxu0  ;;  %v484_v27 = vpop.f32.mrb[2].mxu1 }
 0x173   : > { %v437_v28 = vmul.f32 0.35355338, %v432_v22  ;;  %v487_v29 = vpack.c.bf16 %v482_v23, %v482_v23  ;;  %v1308_v30 = vpop.f32.mrb[3].mxu0  ;;  %v1316_v31 = vpop.f32.mrb[3].mxu1 }
 0x175   : > { %v438_v32 = vpack.c.bf16 %v437_v28, %v437_v28  ;;  %545 = vrot.lane.b32.xlu0 %v487_v29, %s1703_s30  ;;  %v563_v33 = vsel %vm558_vm2, %v487_v29, 0 }
 0x176   : > { %1326 = vmatpush3.bf16.xpose.msra.mxu1 %v563_v33 }
 0x177   : > { %538 = vrot.lane.b32.xlu1 %v438_v32, %s1703_s30  ;;  %1337 = vmatprep.subr.bf16.mxu1 %v1701_v0 }
 0x179   : > { %547 = vrot.lane.b32.xlu0 %v487_v29, %s1704_s19  ;;  %v530_v34 = vpop.f32.mrb[4].mxu0 }
 0x17a   : > { %v1323_v35 = vpop.f32.mrb[5].mxu0  ;;  %v531_v43 = vadd.f32 %v530_v34, %v492_v39 }
 0x17b   : > { %549 = vrot.lane.b32.xlu1 %v487_v29, %s1705_s10  ;;  %v533_v36 = vpop.f32.mrb[6].mxu0 }
 0x17c   : > { %v1324_v37 = vpop.f32.mrb[7].mxu0  ;;  %v2021_v47 = vpack.c.bf16 %v531_v43, %v531_v43 }
 0x17d   : > { %540 = vrot.lane.b32.xlu0 %v438_v32, %s1704_s19  ;;  %1328 = vmatmul.mubr.msk.bf16.vlgmr.msra.gmra.mrb[4].mxu1 %vm558_vm2, %v438_v32 }
 0x17e   : > { %1339 = vmatprep.mubr.msk.bf16.mxu1 %vm1702_vm0, %v1701_v0  ;;  %v801_v49 = vsel %vm799_vm3, %v2021_v47, 0 }
 0x17f   : > { %542 = vrot.lane.b32.xlu1 %v438_v32, %s1705_s10 }
 0x1e7   : > { %v546_v40 = vpop.permute.xlu0 %545 }
 0x1e8   : > { %v609_v41 = vsel %vm558_vm2, %v546_v40, 0 }
 0x1e9   : > { %1332 = vmatpush3.bf16.xpose.msra.mxu0 %v609_v41  ;;  %v539_v42 = vpop.permute.xlu1 %538 }
 0x1ea   : > { %1343 = vmatprep.subr.bf16.mxu0 %v1701_v0 }
 0x1eb   : > { %v548_v44 = vpop.permute.xlu0 %547 }
 0x1ec   : > { %v655_v45 = vsel %vm558_vm2, %v548_v44, 0 }
 0x1ed   : > { %v550_v46 = vpop.permute.xlu1 %549  ;;  %1338 = vmatpush3.bf16.xpose.msra.mxu1 %v655_v45 }
 0x1ee   : > { %1349 = vmatprep.subr.bf16.mxu1 %v1701_v0  ;;  %v701_v48 = vsel %vm558_vm2, %v550_v46, 0 }
 0x1ef   : > { %v541_v50 = vpop.permute.xlu0 %540 }
 0x1f0   : > { %1334 = vmatmul.mubr.msk.bf16.vlgmr.msra.gmra.mrb[8].mxu0 %vm558_vm2, %v539_v42 }
 0x1f1   : > { %1344 = vmatpush3.bf16.xpose.msra.mxu0 %v701_v48  ;;  %1345 = vmatprep.mubr.msk.bf16.mxu0 %vm1702_vm0, %v1701_v0  ;;  %v543_v51 = vpop.permute.xlu1 %542 }
 0x1f2   : > { %1355 = vmatprep.subr.bf16.mxu0 %v1701_v0 }
 0x1f4   : > { %1340 = vmatmul.mubr.msk.bf16.vlgmr.msra.gmra.mrb[8].mxu1 %vm558_vm2, %v541_v50 }
 0x1f5   : > { %1350 = vmatpush3.bf16.msra.mxu1 %v801_v49  ;;  %1351 = vmatprep.mubr.msk.bf16.mxu1 %vm1702_vm0, %v1701_v0 }
 0x1f6   : > { %1361 = vmatprep.subr.bf16.mxu1 %v1701_v0 }
 0x1f8   : > { %1346 = vmatmul.mubr.msk.bf16.vlgmr.msra.gmra.mrb[12].mxu0 %vm558_vm2, %v543_v51 }
 0x1f9   : > { %1357 = vmatprep.mubr.msk.bf16.mxu0 %vm1702_vm0, %v1701_v0 }
 0x250   : > { %v599_v54 = vpop.f32.mrb[4].mxu1 }
 0x251   : > { %v600_v55 = vadd.f32 %v599_v54, %v375_v53  ;;  %v1329_v56 = vpop.f32.mrb[5].mxu1 }
 0x252   : > { %v602_v57 = vpop.f32.mrb[6].mxu1 }
 0x253   : > { %v1330_v58 = vpop.f32.mrb[7].mxu1  ;;  %v743_v59 = vsel %vm558_vm2, %v600_v55, -inf }
 0x254   : > { %744 = vmax.xlane.f32.xlu0 %v743_v59 }
 0x2c3   : > { %v645_v60 = vpop.f32.mrb[8].mxu0 }
 0x2c4   : > { %v646_v61 = vadd.f32 %v645_v60, %v375_v53  ;;  %v1335_v62 = vpop.f32.mrb[9].mxu0 }
 0x2c5   : > { %v648_v63 = vpop.f32.mrb[10].mxu0 }
 0x2c6   : > { %v1336_v1 = vpop.f32.mrb[11].mxu0  ;;  %v746_v2 = vsel %vm558_vm2, %v646_v61, -inf  ;;  %v386_v63 = vld [vmem:[#allocation2 + $0x30] sm:$0xff] }
 0x2c7   : > { %v691_v3 = vpop.f32.mrb[8].mxu1  ;;  %747 = vmax.xlane.f32.xlu1 %v746_v2  ;;  %v387_v1 = vld [vmem:[#allocation2 + $0x38] sm:$0xff] }
 0x2c8   : > { %v692_v4 = vadd.f32 %v691_v3, %v375_v53  ;;  %v1341_v5 = vpop.f32.mrb[9].mxu1 }
 0x2c9   : > { %v694_v6 = vpop.f32.mrb[10].mxu1 }
 0x2ca   : > { %v1342_v7 = vpop.f32.mrb[11].mxu1  ;;  %v749_v8 = vsel %vm558_vm2, %v692_v4, -inf }
 0x2cb   : > { %750 = vmax.xlane.f32.xlu0 %v749_v8  ;;  %v737_v9 = vpop.f32.mrb[12].mxu0 }
 0x2cc   : > { %v738_v10 = vadd.f32 %v737_v9, %v375_v53  ;;  %v1347_v11 = vpop.f32.mrb[13].mxu0 }
 0x2cd   : > { %v740_v12 = vpop.f32.mrb[14].mxu0 }
 0x2ce   : > { %v1348_v13 = vpop.f32.mrb[15].mxu0  ;;  %v752_v15 = vsel %vm558_vm2, %v738_v10, -inf }
 0x2cf   : > { %753 = vmax.xlane.f32.xlu0 %v752_v15 }
 0x2d8   : > { %552 = vrot.lane.b32.xlu1 %v2021_v47, %s1703_s30  ;;  %s1709_s30 = smov [#allocation11]  }
 0x2e1   : > { %v745_v16 = vpop.xlane.xlu0 %744 }
 0x2e2   : > { %v755_v18 = vsub.f32 %v600_v55, %v745_v16 }
 0x2e4   : > { %v759_v19 = vmul.f32 1.442695, %v755_v18 }
 0x2e6   : > { %1457 = vpow2.f32 %v759_v19 }
 0x2f0   : > { %v1458_v20 = vpop.eup %1457 }
 0x2f1   : > { %v767_v21 = vsel %vm558_vm2, %v1458_v20, 0.0 }
 0x2fc   : > { %768 = vadd.xlane.f32.xlu1 %v767_v21 }
 0x354   : > { %v748_v22 = vpop.xlane.xlu1 %747 }
 0x355   : > { %v756_v23 = vsub.f32 %v646_v61, %v748_v22 }
 0x357   : > { %v761_v24 = vmul.f32 1.442695, %v756_v23 }
 0x358   : > { %v751_v25 = vpop.xlane.xlu0 %750  ;;  %v553_v26 = vpop.permute.xlu1 %552 }
 0x359   : > { %1459 = vpow2.f32 %v761_v24  ;;  %v757_v27 = vsub.f32 %v692_v4, %v751_v25  ;;  %v847_v28 = vsel %vm799_vm3, %v553_v26, 0 }
 0x35a   : > { %1356 = vmatpush3.bf16.msra.mxu0 %v847_v28 }
 0x35b   : > { %v763_v29 = vmul.f32 1.442695, %v757_v27  ;;  %1367 = vmatprep.subr.bf16.mxu0 %v1701_v0 }
 0x35c   : > { %v754_v30 = vpop.xlane.xlu0 %753 }
 0x35d   : > { %1461 = vpow2.f32 %v763_v29  ;;  %v758_v31 = vsub.f32 %v738_v10, %v754_v30 }
 0x35f   : > { %v765_v32 = vmul.f32 1.442695, %v758_v31 }
 0x361   : > { %1463 = vpow2.f32 %v765_v32 }
 0x363   : > { %v1460_v33 = vpop.eup %1459 }
 0x364   : > { %v770_v34 = vsel %vm558_vm2, %v1460_v33, 0.0 }
 0x365   : > { %771 = vadd.xlane.f32.xlu0 %v770_v34 }
 0x367   : > { %v1462_v35 = vpop.eup %1461 }
 0x368   : > { %v773_v36 = vsel %vm558_vm2, %v1462_v35, 0.0 }
 0x369   : > { %774 = vadd.xlane.f32.xlu1 %v773_v36 }
 0x36b   : > { %v1464_v37 = vpop.eup %1463 }
 0x36c   : > { %v776_v38 = vsel %vm558_vm2, %v1464_v37, 0.0 }
 0x36d   : > { %777 = vadd.xlane.f32.xlu0 %v776_v38 }
 0x37a   : > { %556 = vrot.lane.b32.xlu1 %v2021_v47, %s1705_s10 }
 0x383   : > { %554 = vrot.lane.b32.xlu0 %v2021_v47, %s1704_s19  ;;  %s1593_s19 = sshll.u32 %s1709_s30, 4  ;;  %s1594_s19 = int_to_ptr.vmem [resolvable:$false] %s1593_s19 }
 0x384   : > { %p1596_p5 = scmp.lt.s32.totalorder %s2088_s14, %s1594_s19 }
 0x389   : > { %v769_v39 = vpop.xlane.xlu1 %768 }
 0x38a   : > { %1465 = vrcp.f32 %v769_v39 }
 0x394   : > { %v1466_v40 = vpop.eup %1465 }
 0x395   : > { %v780_v41 = vmul.f32 %v1466_v40, %v1458_v20 }
 0x397   : > { %v787_v42 = vpack.c.bf16 %v780_v41, %v780_v41 }
 0x399   : > { %792 = vst.msk [vmem:[%s1961_s23] sm:$0xf] %vm791_vm4, %v787_v42  ;;  %1352 = vmatmul.mubr.msk.bf16.vlgmr.msra.gmra.mrb[12].mxu1 %vm558_vm2, %v787_v42 }
 0x39a   : > { %1363 = vmatprep.mubr.msk.bf16.mxu1 %vm1702_vm0, %v1701_v0 }
 0x3f2   : > { %v772_v43 = vpop.xlane.xlu0 %771 }
 0x3f3   : > { %1467 = vrcp.f32 %v772_v43 }
 0x3f6   : > { %v775_v44 = vpop.xlane.xlu1 %774 }
 0x3f7   : > { %1469 = vrcp.f32 %v775_v44 }
 0x3fa   : > { %v778_v45 = vpop.xlane.xlu0 %777  ;;  %v557_v49 = vpop.permute.xlu1 %556 }
 0x3fb   : > { %1471 = vrcp.f32 %v778_v45  ;;  %v939_v54 = vsel %vm799_vm3, %v557_v49, 0 }
 0x3fd   : > { %v1468_v46 = vpop.eup %1467 }
 0x3fe   : > { %v782_v47 = vmul.f32 %v1468_v46, %v1460_v33  ;;  %v555_v48 = vpop.permute.xlu0 %554 }
 0x3ff   : > { %v893_v50 = vsel %vm799_vm3, %v555_v48, 0 }
 0x400   : > { %1362 = vmatpush3.bf16.msra.mxu1 %v893_v50  ;;  %v788_v51 = vpack.c.bf16 %v782_v47, %v782_v47 }
 0x401   : > { %v1470_v52 = vpop.eup %1469  ;;  %1373 = vmatprep.subr.bf16.mxu1 %v1701_v0 }
 0x402   : > { %v784_v53 = vmul.f32 %v1470_v52, %v1462_v35  ;;  %793 = vst.msk [vmem:[%s1961_s23 + $0x4] sm:$0xf] %vm791_vm4, %v788_v51  ;;  %1358 = vmatmul.mubr.msk.bf16.vlgmr.msra.gmra.mrb[16].mxu0 %vm558_vm2, %v788_v51 }
 0x403   : > { %1368 = vmatpush3.bf16.msra.mxu0 %v939_v54  ;;  %1369 = vmatprep.mubr.msk.bf16.mxu0 %vm1702_vm0, %v1701_v0 }
 0x404   : > { %v789_v55 = vpack.c.bf16 %v784_v53, %v784_v53 }
 0x405   : > { %v1472_v56 = vpop.eup %1471 }
 0x406   : > { %v786_v57 = vmul.f32 %v1472_v56, %v1464_v37  ;;  %794 = vst.msk [vmem:[%s1961_s23 + $0x8] sm:$0xf] %vm791_vm4, %v789_v55  ;;  %1364 = vmatmul.mubr.msk.bf16.vlgmr.msra.gmra.mrb[16].mxu1 %vm558_vm2, %v789_v55 }
 0x407   : > { %1377 = vmatprep.mubr.msk.bf16.mxu1 %vm1702_vm0, %v1701_v0  ;;  %1374 = vmatpush3.bf16.msra.mxu1 %v386_v63 }
 0x408   : > { %v790_v58 = vpack.c.bf16 %v786_v57, %v786_v57  ;;  %1375 = vmatprep.subr.bf16.mxu1 %v1701_v0 }
 0x40a   : > { %795 = vst.msk [vmem:[%s1961_s23 + $0xc] sm:$0xf] %vm791_vm4, %v790_v58  ;;  %1370 = vmatmul.mubr.msk.bf16.vlgmr.msra.gmra.mrb[20].mxu0 %vm558_vm2, %v790_v58  ;;  %s1595_s23 = scalar_lea.vmem %s1594_s19, 512 }
 0x40b   : > { %1376 = vmatpush3.bf16.msra.mxu1 %v387_v1  ;;  %p1597_p13 = scmp.lt.s32.totalorder %s1595_s23, %s1589_s18 }
 0x40d   : > { %p1598_p9 = por %p1597_p13, %p1596_p5 }
 0x40f   : > { %p1599_p1 = pnand %p1598_p9, %p1592_p12 }
 0x46c   : > { %v837_v59 = vpop.f32.mrb[12].mxu1 }
 0x46d   : > { %v1353_v60 = vpop.f32.mrb[13].mxu1  ;;  %v981_v19 = vpack.c.bf16 %v837_v59, %v837_v59 }
 0x46e   : > { %v840_v61 = vpop.f32.mrb[14].mxu1 }
 0x46f   : > { %v1354_v62 = vpop.f32.mrb[15].mxu1 }
 0x4d5   : > { %v883_v2 = vpop.f32.mrb[16].mxu0 }
 0x4d6   : > { %v982_v3 = vpack.c.bf16 %v883_v2, %v883_v2  ;;  %v1359_v4 = vpop.f32.mrb[17].mxu0 }
 0x4d7   : > { %v886_v5 = vpop.f32.mrb[18].mxu0 }
 0x4d8   : > { %986 = vrot.lane.b32.xlu1 %v982_v3, %s1706_s21  ;;  %v1360_v6 = vpop.f32.mrb[19].mxu0 }
 0x4d9   : > { %v929_v7 = vpop.f32.mrb[16].mxu1 }
 0x4da   : > { %v983_v8 = vpack.c.bf16 %v929_v7, %v929_v7  ;;  %v1365_v9 = vpop.f32.mrb[17].mxu1 }
 0x4db   : > { %v932_v10 = vpop.f32.mrb[18].mxu1 }
 0x4dc   : > { %989 = vrot.lane.b32.xlu0 %v983_v8, %s1707_s15  ;;  %v1366_v11 = vpop.f32.mrb[19].mxu1 }
 0x4dd   : > { %v975_v12 = vpop.f32.mrb[20].mxu0 }
 0x4de   : > { %v984_v13 = vpack.c.bf16 %v975_v12, %v975_v12  ;;  %v1371_v0 = vpop.f32.mrb[21].mxu0 }
 0x4df   : > { %v978_v15 = vpop.f32.mrb[22].mxu0 }
 0x4e0   : > { %992 = vrot.lane.b32.xlu1 %v984_v13, %s1708_s16  ;;  %v1372_v16 = vpop.f32.mrb[23].mxu0 }
 0x54a   : > { %v987_v18 = vpop.permute.xlu1 %986 }
 0x54b   : > { %v996_v21 = vsel %vm558_vm2, %v981_v19, %v987_v18 }
 0x54e   : > { %v990_v20 = vpop.permute.xlu0 %989 }
 0x54f   : > { %v999_v22 = vsel %vm997_vm5, %v996_v21, %v990_v20 }
 0x552   : > { %v993_v23 = vpop.permute.xlu1 %992 }
 0x553   : > { %v1002_v24 = vsel %vm1000_vm6, %v999_v22, %v993_v23 }
 0x554   : > { %1378 = vmatmul.mubr.msk.bf16.vlgmr.msra.gmra.mrb[20].mxu1 %vm393_vm1, %v1002_v24 }
 0x555   : > { %1602 = shalt.err (!%p1599_p1)
}
 0x556   : > { %s1603_s10 = scalar_lea.hbm %s2086_s17, 256  ;;  %s1607_s21 = scalar_lea.hbm %s2176_s7, 512 }
 0x557   : > { %p1604_p3 = scmp.ne.s32.totalorder %s2086_s17, %s1603_s10  ;;  %p1608_p10 = scmp.lt.u32.totalorder %s2086_s17, %s2176_s7 }
 0x558   : > { %p1609_p7 = scmp.lt.u32.totalorder %s1607_s21, %s1603_s10  ;;  %p1611_p4 = scmp.lt.u32.totalorder %s1603_s10, %s2086_s17 }
 0x559   : > { %p1605_p0 = pnand %p1604_p3, %p2210_p6 }
 0x55a   : > { %p1610_p8 = por %p1609_p7, %p1608_p10 }
 0x55b   : > { %p1606_p2 = pneg %p1605_p0 }
 0x55c   : > { %p1612_p11 = por %p1611_p4, %p1610_p8 }
 0x55e   : > { %p1613_p12 = pnand %p1612_p11, %p1606_p2 }
 0x560   : > { %1616 = shalt.err (!%p1613_p12)
}
 0x561   : > { %s1710_s11 = smov 64   ;;  %s1711_s1 = smov 4   ;;  %v1005_v25 = vsub.s32 3, %v1994_v14 }
 0x562   : > { %1391 = dma.vmem_to_hbm [thread:$0]  (%p2210_p6), %s2088_s14, 256, %s2086_s17, %s1056_s8, %s1710_s11, %s1710_s11, %s1711_s1  }
 0x563   : > { %v1006_v26 = vrot.slane %v2001_v17, %v1005_v25  ;;  %s1266_s26 = sshll.u32 %s1774_s28, 7  ;;  %s1069_s18 = sshll.u32 %s342_s29, 4  ;;  %s2124_s18 = int_to_ptr.vmem [resolvable:$true] %s1069_s18 }
 0x564   : > { %s2122_s23 = scalar_lea.hbm %s2175_s6, %s1266_s26  ;;  %s1051_s28 = scalar_lea.sflag [#allocation6], %s1923_s9 }
 0x565   : > { %s1617_s14 = scalar_lea.vmem %s2124_s18, 128  ;;  %s1712_s17 = smov [#allocation10]  }
 0x566   : > { %p1618_p5 = scmp.ne.s32.totalorder %s2124_s18, %s1617_s14  ;;  %s1621_s8 = sshll.u32 %s1712_s17, 4  ;;  %s1622_s8 = int_to_ptr.vmem [resolvable:$false] %s1621_s8 }
 0x567   : > { %s1623_s10 = scalar_lea.vmem %s1622_s8, 256  ;;  %p1624_p1 = scmp.lt.s32.totalorder %s2124_s18, %s1622_s8 }
 0x568   : > { %p1619_p13 = pnand %p1618_p5, %p2210_p6  ;;  %p1625_p3 = scmp.lt.s32.totalorder %s1623_s10, %s1617_s14 }
 0x56a   : > { %p1620_p9 = pneg %p1619_p13  ;;  %p1626_p0 = por %p1625_p3, %p1624_p1 }
 0x56c   : > { %p1627_p2 = pnand %p1626_p0, %p1620_p9 }
 0x627   : > { %v1043_v27 = vpop.f32.mrb[20].mxu1 }
 0x628   : > { %v1044_v28 = vadd.f32 %v1043_v27, %v1006_v26  ;;  %v1379_v29 = vpop.f32.mrb[21].mxu1 }
 0x629   : > { %v1046_v30 = vpop.f32.mrb[22].mxu1 }
 0x62a   : > { %1049 = vst.msk [vmem:[%s342_s29] sm:$0xff] %vm393_vm1, %v1044_v28  ;;  %v1380_v14 = vpop.f32.mrb[23].mxu1 }
 0x62b   : > { %1630 = shalt.err (!%p1627_p2)
}
 0x62c   : > { %s1631_s9 = scalar_lea.hbm %s2122_s23, 128  ;;  %s1635_s22 = scalar_lea.hbm %s2175_s6, 256 }
 0x62d   : > { %p1632_p10 = scmp.ne.s32.totalorder %s2122_s23, %s1631_s9  ;;  %p1636_p4 = scmp.lt.u32.totalorder %s2122_s23, %s2175_s6 }
 0x62e   : > { %p1637_p11 = scmp.lt.u32.totalorder %s1635_s22, %s1631_s9  ;;  %p1639_p5 = scmp.lt.u32.totalorder %s1631_s9, %s2122_s23 }
 0x62f   : > { %p1633_p7 = pnand %p1632_p10, %p2210_p6 }
 0x630   : > { %p1638_p12 = por %p1637_p11, %p1636_p4 }
 0x631   : > { %p1634_p8 = pneg %p1633_p7 }
 0x632   : > { %p1640_p13 = por %p1639_p5, %p1638_p12 }
 0x634   : > { %p1641_p9 = pnand %p1640_p13, %p1634_p8 }
 0x636   : > { %1644 = shalt.err (!%p1641_p9)
}
 0x637   : > { %1390 = dma.vmem_to_hbm [thread:$0]  (%p2210_p6), %s2124_s18, 128, %s2122_s23, %s1051_s28  }
 0x638 PF: > { %s2211_s15 = sld [smem:[#allocation23_spill]]  ;;  %s1097_s16 = sand.u32 1, %s1683_s24  }
 0x639   : > { %p2212_p1 = scmp.ne.s32.totalorder %s2194_s13, 0  ;;  %s1098_s11 = scalar_lea.sflag [#allocation6], %s1097_s16 }
 0x63e   : > { %p2213_p3 = scmp.ge.s32.totalorder %s2211_s15, 2 }
 0x640   : > { %p1405_p0 = pnand %p2213_p3, %p2212_p1 }
 0x642   : > { %1674 = dma.done.wait (!%p1405_p0), %s1098_s11, 128  }
 0x643   : > { %1676 = vsyncadd (!%p1405_p0), %s1098_s11, 4294967168  ;;  %s1107_s1 = scalar_lea.sflag [#allocation12], %s1097_s16 }
 0x644   : > { %1678 = dma.done.wait (!%p1405_p0), %s1107_s1, 256  }
 0x645   : > { %1680 = vsyncadd (!%p1405_p0), %s1107_s1, 4294967040  ;;  %s2214_s27 = sld [smem:[#allocation24_spill]]  ;;  %s2215_s12 = sld [smem:[#allocation22_spill]] }
 0x646   : > { %s2216_s26 = sld [smem:[#allocation25_spill]]  ;;  %s2217_s24 = smov %s1687_s25 }
 0x64b   : > { %p27_p6 = scmp.ge.s32.totalorder %s2214_s27, 4   ;;  %s2218_s25 = smov %s2215_s12 }
 0x64d   :  { %29 = sbr.rel (!%p27_p6) target bundleno = 11 (0xb), region = 137 }
 0x654   :  { %1112 = vsyncpa [#allocation5], 1 }
 0x655   :  { %1114 = vsyncpa [#allocation5 + $0x1], 1 }
 0x656   :  { %1115 = vsyncpa [#allocation8], 1 }
 0x657   :  { %1117 = vsyncpa [#allocation8 + $0x1], 1 }
 0x658   :  { %1118 = vsyncpa [#allocation6], 1 }
 0x659   :  { %1120 = vsyncpa [#allocation6 + $0x1], 1 }
 0x65a   :  { %1121 = vsyncpa [#allocation12], 1 }
 0x65b   :  { %1123 = vsyncpa [#allocation12 + $0x1], 1 }
 0x65c   :  { %1124 = vsyncmov [#allocation3] }
 0x65f   :  { %s1125_s13 = vpop.sfrf %1124 }
 0x660   :  { %p1271_p2 = scmp.ne.s32.totalorder %s1125_s13, 0 }
 0x662   :  { %1129 = shalt.err (%p1271_p2)  }

</bundles_post_ra>
